<compile_context>
chip_gen: v6e
topology: v6e:2x2x1
jax: 0.10.0
libtpu: 0.0.40
codegen_flags: <defaults>
</compile_context>

<pallas_src>
import functools

import jax
import jax.numpy as jnp
import numpy as np
from jax.experimental import pallas as pl
from jax.experimental.pallas import tpu as pltpu


def _round_up(v, m):
    return ((v + m - 1) // m) * m


# ---------------------------------------------------------------------------
# output_baseline (the spec)
# ---------------------------------------------------------------------------

def _output_baseline_kernel(x_ref, wt_ref, b_ref, out_ref):
    # x (tr, F) is the streaming LHS; the tiny stacked weight (F, 2) is the
    # MXU-stationary RHS -> no transpose/push of the big operand per grid step.
    x16 = x_ref[...].astype(jnp.bfloat16)
    w16 = wt_ref[...].astype(jnp.bfloat16)
    s = jax.lax.dot_general(x16, w16, (((1,), (0,)), ((), ())),
                            preferred_element_type=jnp.float32)      # (tr, 2)
    # Single merged store; bias is a (1, 2) broadcast (no per-head slice stores).
    out_ref[...] = (s + b_ref[...]).astype(out_ref.dtype)


def output_baseline_pallas(bert_output, w1, b1, w2, b2, *,
                           row_tile=2048, buffer_count=3):
    """bert_output: [B, S, F] (f32 or bf16); w1, w2: [1, F]; b1, b2: scalars.

    Returns (pos1, pos2), each [B, S].  bf16 inputs are accepted as-is (halves
    HBM traffic); the MXU always runs bf16 operands with f32 accumulation.
    """
    B, S, F = bert_output.shape
    N = B * S
    x2 = bert_output.reshape(N, F)                 # keep caller dtype

    itemsize = jnp.dtype(bert_output.dtype).itemsize
    sub = max(8, 32 // itemsize)                   # sublane tile: 8 f32 / 16 bf16
    pad = (-N) % sub
    if pad:
        x2 = jnp.pad(x2, ((0, pad), (0, 0)))
    Np = N + pad

    # Stacked head weights (F, 2) + biases as a (1, 2) VMEM row.
    wt = jnp.stack([jnp.reshape(w1, (F,)), jnp.reshape(w2, (F,))],
                   axis=1).astype(jnp.float32)                          # (F, 2)
    bias = jnp.stack([jnp.asarray(b1, jnp.float32).reshape(()),
                      jnp.asarray(b2, jnp.float32).reshape(())]).reshape(1, 2)

    # Biggest tile that still leaves >= 2 grid steps (v7x megacore), aligned.
    if Np <= sub:
        tr = Np
    else:
        half = _round_up(pl.cdiv(Np, 2), sub)
        tr = max(sub, min(_round_up(row_tile, sub), half))
    steps = pl.cdiv(Np, tr)

    x_spec_kwargs = {}
    if buffer_count is not None and buffer_count > 2 and steps >= buffer_count:
        # Cheap sweepable knob: deeper buffering if DMA latency is still exposed.
        x_spec_kwargs = dict(pipeline_mode=pl.Buffered(buffer_count))
    x_spec = pl.BlockSpec((tr, F), lambda i: (i, 0), **x_spec_kwargs)

    out = pl.pallas_call(
        _output_baseline_kernel,
        out_shape=jax.ShapeDtypeStruct((Np, 2), bert_output.dtype),
        grid_spec=pltpu.PrefetchScalarGridSpec(
            num_scalar_prefetch=0,
            grid=(steps,),
            in_specs=[
                x_spec,                                              # rows of x
                pl.BlockSpec((F, 2), lambda i: (0, 0)),              # stacked W
                pl.BlockSpec((1, 2), lambda i: (0, 0)),              # biases
            ],
            out_specs=pl.BlockSpec((tr, 2), lambda i: (i, 0)),
        ),
        compiler_params=pltpu.CompilerParams(
            dimension_semantics=("parallel",),
            vmem_limit_bytes=64 * 1024 * 1024),
    )(x2, wt, bias)

    pos = out[:N]
    return pos[:, 0].reshape(B, S), pos[:, 1].reshape(B, S)


def output_baseline_ref(bert_output, w1, b1, w2, b2):
    hp = jax.lax.Precision.HIGHEST
    x = bert_output.astype(jnp.float32)
    pos1 = jnp.einsum('bsf,f->bs', x, jnp.reshape(w1, (-1,)), precision=hp) + b1
    pos2 = jnp.einsum('bsf,f->bs', x, jnp.reshape(w2, (-1,)), precision=hp) + b2
    return pos1, pos2


# ---------------------------------------------------------------------------
# self_matching (secondary kernel from the same file), review-optimized
# ---------------------------------------------------------------------------

def _self_matching_kernel(x_ref, negmask_ref, w_ref, out_ref, *,
                          row_chunk, d_model, paired):
    xp = x_ref[...]                     # (bt, S, DP) f32; DP = 2*D when `paired`
    neg = negmask_ref[...]              # (bt, 1, S)  precomputed (1-mask)*-1e4
    S = xp.shape[1]
    DP = xp.shape[2]
    D = d_model
    rc = row_chunk
    n_chunks = S // rc

    w2 = w_ref[0:1, :].reshape(1, 1, DP)   # multiplies x_j
    w3 = w_ref[1:2, :].reshape(1, 1, DP)   # multiplies x_i * x_j

    xp16 = xp.astype(jnp.bfloat16)
    lhs16 = (xp * w3 + w2).astype(jnp.bfloat16)      # (bt, S, DP)

    def chunk_scores(lo):
        # score[i,j] = ((x_i*w3) + w2).x_j + maskbias_j ; w1 row-term and the
        # linear bias are per-row constants -> exact no-ops under softmax.
        sc = jnp.einsum('bid,bjd->bij', lhs16[:, lo:lo + rc, :], xp16,
                        preferred_element_type=jnp.float32)          # (bt, rc, S)
        sc = sc + neg
        m = jnp.max(sc, axis=-1, keepdims=True)
        e = jnp.exp(sc - m)
        inv_l = pl.reciprocal(jnp.sum(e, axis=-1, keepdims=True), approx=True)
        return e.astype(jnp.bfloat16), inv_l

    # Pass 1: v1 rows chunk-by-chunk; only one (bt, rc, S) score/e block is
    # live at a time (bounds VMEM for long S).  Normalization is folded into
    # the output: v1 = (e @ x) * inv_l == softmax(score) @ x  (exact).
    v1_chunks = []
    cached = []
    for c in range(n_chunks):
        lo = c * rc
        e16, inv_l = chunk_scores(lo)
        v1_c = jnp.einsum('bij,bjd->bid', e16, xp16,
                          preferred_element_type=jnp.float32) * inv_l
        v1_chunks.append(v1_c)
        if n_chunks == 1:
            cached.append((e16, inv_l))
    v1p = v1_chunks[0] if n_chunks == 1 else jnp.concatenate(v1_chunks, axis=1)
    v1p16 = v1p.astype(jnp.bfloat16)

    # Pass 2: v2 = p @ v1 needs the full v1 (p@p@x reassociated), so scores are
    # recomputed per chunk (two-pass scheme); single chunk reuses pass-1 e/l.
    dt = out_ref.dtype
    for c in range(n_chunks):
        lo = c * rc
        e16, inv_l = cached[0] if n_chunks == 1 else chunk_scores(lo)
        v2_c = jnp.einsum('bij,bjd->bid', e16, v1p16,
                          preferred_element_type=jnp.float32) * inv_l
        x_c = xp[:, lo:lo + rc, :]
        v1_c = v1_chunks[c]
        rows = slice(lo, lo + rc)
        if paired:
            # DP = 2*D: data in lanes [0, D), zeros in [D, 2D).  Rolling the
            # second member of each pair by D lanes (XLU slot, ~free) packs a
            # lane-dense 2*D slab -> three unmasked stores instead of six
            # masked half-tile stores.
            out_ref[:, rows, 0 * DP:1 * DP] = (
                x_c + pltpu.roll(v1_c, shift=D, axis=2)).astype(dt)
            out_ref[:, rows, 1 * DP:2 * DP] = (
                (x_c - v1_c) + pltpu.roll(x_c * v1_c, shift=D, axis=2)).astype(dt)
            out_ref[:, rows, 2 * DP:3 * DP] = (
                v2_c + pltpu.roll(x_c - v2_c, shift=D, axis=2)).astype(dt)
        else:
            out_ref[:, rows, 0 * D:1 * D] = x_c.astype(dt)
            out_ref[:, rows, 1 * D:2 * D] = v1_c.astype(dt)
            out_ref[:, rows, 2 * D:3 * D] = (x_c - v1_c).astype(dt)
            out_ref[:, rows, 3 * D:4 * D] = (x_c * v1_c).astype(dt)
            out_ref[:, rows, 4 * D:5 * D] = v2_c.astype(dt)
            out_ref[:, rows, 5 * D:6 * D] = (x_c - v2_c).astype(dt)


def self_matching_pallas(x, attention_mask, weight, bias, *,
                         batch_tile=None, row_chunk=None):
    """x: [B,S,D] f32; attention_mask: [B,S]; weight: [1,3D]; bias: scalar."""
    del bias  # per-row constant under softmax -> exact no-op (forward only)
    B, S, D = x.shape

    # >= 2 grid steps by default so v7x's two TensorCores split batch tiles.
    bt = batch_tile if batch_tile is not None else max(1, -(-B // 2))
    bt = min(bt, B)

    # i-row chunk bounds live score/e to (bt, row_chunk, S) f32.
    if row_chunk is None:
        row_chunk = 256 if (S > 512 and S % 256 == 0) else S
    if S % row_chunk != 0 or (row_chunk % 8 != 0 and row_chunk != S):
        row_chunk = S

    paired = (2 * D) % 128 == 0          # lane-dense paired output stores
    DP = 2 * D if paired else D

    neg_mask = ((1.0 - attention_mask.astype(jnp.float32)) * -10000.0
                ).reshape(B, 1, S)
    wfull = jnp.reshape(weight, (3, D)).astype(jnp.float32)
    w23 = jnp.pad(wfull[1:3], ((0, 0), (0, DP - D)))   # drop w1 (softmax-invariant)
    xp = jnp.pad(x.astype(jnp.float32), ((0, 0), (0, 0), (0, DP - D)))

    kernel = functools.partial(_self_matching_kernel, row_chunk=row_chunk,
                               d_model=D, paired=paired)

    return pl.pallas_call(
        kernel,
        out_shape=jax.ShapeDtypeStruct((B, S, 6 * D), x.dtype),
        grid_spec=pltpu.PrefetchScalarGridSpec(
            num_scalar_prefetch=0,
            grid=(pl.cdiv(B, bt),),
            in_specs=[
                pl.BlockSpec((bt, S, DP), lambda b: (b, 0, 0)),    # padded x
                pl.BlockSpec((bt, 1, S), lambda b: (b, 0, 0)),     # mask bias
                pl.BlockSpec((2, DP), lambda b: (0, 0)),           # w2, w3
            ],
            out_specs=pl.BlockSpec((bt, S, 6 * D), lambda b: (b, 0, 0)),
        ),
        compiler_params=pltpu.CompilerParams(
            dimension_semantics=("parallel",),
            vmem_limit_bytes=64 * 1024 * 1024),
    )(xp, neg_mask, w23)


def self_matching_ref(x, attention_mask, weight, bias):
    """Pure-JAX mirror of the PyTorch self_matching forward."""
    B, S, D = x.shape
    hp = jax.lax.Precision.HIGHEST
    expand = jnp.broadcast_to(x[:, :, None, :], (B, S, S, D))
    expand2 = jnp.broadcast_to(x[:, None, :, :], (B, S, S, D))
    final_expand = jnp.concatenate([expand, expand2, expand * expand2], axis=3)
    score = jnp.einsum('bijk,k->bij', final_expand, weight[0], precision=hp) + bias
    ext = (1.0 - attention_mask.astype(x.dtype))[:, None, :] * -10000.0
    score = score + ext
    p = jax.nn.softmax(score, axis=2)
    v1 = jnp.matmul(p, x, precision=hp)
    p2 = jnp.matmul(p, p, precision=hp)
    v2 = jnp.matmul(p2, x, precision=hp)
    return jnp.concatenate([x, v1, x - v1, x * v1, v2, x - v2], axis=2)


if __name__ == "__main__":
    # Module config: wordnet=True, nell=True, content_dim=16, hidden_size=32
    #   D = hidden_size + 2*content_dim = 64; Linear inputs are 6*D = 384.
    B, S = 2, 8
    content_dim, hidden_size = 16, 32
    D = hidden_size + 2 * content_dim            # 64
    F = 6 * D                                    # 384

    key = jax.random.PRNGKey(0)
    k1, k2, k3, k4, k5, k6, k7, k8 = jax.random.split(key, 8)

    # ---------------- output_baseline (the spec) ----------------
    bert_output = jax.random.normal(k1, (B, S, F), dtype=jnp.float32)
    w1 = jax.random.normal(k2, (1, F), dtype=jnp.float32) * 0.05
    b1 = jax.random.normal(k3, (), dtype=jnp.float32) * 0.05
    w2 = jax.random.normal(k4, (1, F), dtype=jnp.float32) * 0.05
    b2 = jax.random.normal(k5, (), dtype=jnp.float32) * 0.05

    pos1, pos2 = jax.block_until_ready(
        output_baseline_pallas(bert_output, w1, b1, w2, b2))
    r1, r2 = output_baseline_ref(bert_output, w1, b1, w2, b2)
    assert pos1.shape == (B, S) and pos2.shape == (B, S)
    # bf16 MXU operands (f32 accumulation) -> compare at bf16-level tolerance.
    np.testing.assert_allclose(np.asarray(pos1), np.asarray(r1), rtol=2e-2, atol=2e-2)
    np.testing.assert_allclose(np.asarray(pos2), np.asarray(r2), rtol=2e-2, atol=2e-2)

    # bf16-input path (halves HBM traffic; the only lever beyond the f32 roofline).
    p1b, p2b = jax.block_until_ready(
        output_baseline_pallas(bert_output.astype(jnp.bfloat16), w1, b1, w2, b2))
    np.testing.assert_allclose(np.asarray(p1b.astype(jnp.float32)), np.asarray(r1),
                               rtol=5e-2, atol=5e-2)
    np.testing.assert_allclose(np.asarray(p2b.astype(jnp.float32)), np.asarray(r2),
                               rtol=5e-2, atol=5e-2)

    # ---------------- self_matching (secondary kernel) ----------------
    S_sm = 16
    x = jax.random.normal(k6, (B, S_sm, D), dtype=jnp.float32)
    sm_w = jax.random.normal(k7, (1, 3 * D), dtype=jnp.float32) * 0.05
    sm_b = jax.random.normal(k8, (), dtype=jnp.float32) * 0.05
    attention_mask = jnp.concatenate(
        [jnp.ones((B, S_sm - 2), jnp.float32), jnp.zeros((B, 2), jnp.float32)], axis=1)

    sm_ref = self_matching_ref(x, attention_mask, sm_w, sm_b)

    # Default path: single i-chunk per batch tile, batch grid of 2 steps.
    sm_out = jax.block_until_ready(
        self_matching_pallas(x, attention_mask, sm_w, sm_b))
    assert sm_out.shape == (B, S_sm, 6 * D)
    np.testing.assert_allclose(np.asarray(sm_out), np.asarray(sm_ref),
                               rtol=2e-2, atol=2e-2)

    # Chunked two-pass path (row_chunk < S) — the VMEM-bounded variant for long S.
    sm_out_c = jax.block_until_ready(
        self_matching_pallas(x, attention_mask, sm_w, sm_b, row_chunk=8))
    np.testing.assert_allclose(np.asarray(sm_out_c), np.asarray(sm_ref),
                               rtol=2e-2, atol=2e-2)

    print("KERNEL_OK")
</pallas_src>

<mosaic_0001>
module attributes {stable_mosaic.version = 11 : i64} {
  func.func @_output_baseline_kernel(%arg0: i32, %arg1: memref<8x384xf32, #tpu.memory_space<vmem>>, %arg2: memref<384x2xf32, #tpu.memory_space<vmem>>, %arg3: memref<1x2xf32, #tpu.memory_space<vmem>>, %arg4: memref<8x2xf32, #tpu.memory_space<vmem>>) attributes {dimension_semantics = [#tpu.dimension_semantics<parallel>], iteration_bounds = array<i64: 2>, scalar_prefetch = 0 : i64, scratch_operands = 0 : i64, tpu.core_type = #tpu.core_type<tc>, window_params = [{transform_indices = @transform_0, window_bounds = array<i64: 8, 384>}, {pipeline_mode = #tpu.pipeline_mode<synchronous>, transform_indices = @transform_1, window_bounds = array<i64: 384, 2>}, {pipeline_mode = #tpu.pipeline_mode<synchronous>, transform_indices = @transform_2, window_bounds = array<i64: 1, 2>}, {transform_indices = @transform_3, window_bounds = array<i64: 8, 2>}]} {
    %c0 = arith.constant 0 : index
    %c0_0 = arith.constant 0 : index
    %0 = vector.load %arg1[%c0, %c0_0] : memref<8x384xf32, #tpu.memory_space<vmem>>, vector<8x384xf32>
    %1 = arith.truncf %0 : vector<8x384xf32> to vector<8x384xbf16>
    %c0_1 = arith.constant 0 : index
    %c0_2 = arith.constant 0 : index
    %2 = vector.load %arg2[%c0_1, %c0_2] : memref<384x2xf32, #tpu.memory_space<vmem>>, vector<384x2xf32>
    %3 = arith.truncf %2 : vector<384x2xf32> to vector<384x2xbf16>
    %cst = arith.constant dense<0.000000e+00> : vector<8x2xf32>
    %4 = tpu.matmul %1, %3, %cst {dimension_numbers = #tpu.dot_dimension_numbers<[1], [0], [0], [1], [0, 0, 1, 1], [], []>} : vector<8x384xbf16>, vector<384x2xbf16>, vector<8x2xf32> -> vector<8x2xf32>
    %c0_3 = arith.constant 0 : index
    %c0_4 = arith.constant 0 : index
    %5 = vector.load %arg3[%c0_3, %c0_4] : memref<1x2xf32, #tpu.memory_space<vmem>>, vector<1x2xf32>
    %6 = vector.broadcast %5 : vector<1x2xf32> to vector<8x2xf32>
    %7 = arith.addf %4, %6 : vector<8x2xf32>
    %c0_5 = arith.constant 0 : index
    %c0_6 = arith.constant 0 : index
    %8 = vector.load %arg4[%c0_5, %c0_6] : memref<8x2xf32, #tpu.memory_space<vmem>>, vector<8x2xf32>
    tpu.vector_store %arg4[%c0_5, %c0_6], %7 {strides = array<i32>} : memref<8x2xf32, #tpu.memory_space<vmem>>, vector<8x2xf32>,
    return
  }
  func.func @transform_0(%arg0: i32) -> (i32, i32) {
    %c0_i32 = arith.constant 0 : i32
    %c0_i32_0 = arith.constant 0 : i32
    return %arg0, %c0_i32 : i32, i32
  }
  func.func @transform_1(%arg0: i32) -> (i32, i32) {
    %c0_i32 = arith.constant 0 : i32
    %c0_i32_0 = arith.constant 0 : i32
    %c0_i32_1 = arith.constant 0 : i32
    return %c0_i32, %c0_i32_0 : i32, i32
  }
  func.func @transform_2(%arg0: i32) -> (i32, i32) {
    %c0_i32 = arith.constant 0 : i32
    %c0_i32_0 = arith.constant 0 : i32
    %c0_i32_1 = arith.constant 0 : i32
    return %c0_i32, %c0_i32_0 : i32, i32
  }
  func.func @transform_3(%arg0: i32) -> (i32, i32) {
    %c0_i32 = arith.constant 0 : i32
    %c0_i32_0 = arith.constant 0 : i32
    return %arg0, %c0_i32 : i32, i32
  }
}

</mosaic_0001>

<bundles_post_ra>
// kernel: tpu_custom_call.1
= control target key start
LH: loop header
LB: loop body
LE: loop exit
PB: predicated region body
PF: predicated region fallthrough
CT: control target
= control target key end

     0   :  { %s492_s12 = smov 0   ;;  %s684_s0 = inlined_call_operand.vmem [shape: f32[16,384], index: 0, kind: input, shape index: {}]   ;;  %s685_s1 = inlined_call_operand.vmem [shape: f32[384,2], index: 1, kind: input, shape index: {}]   ;;  %s686_s2 = inlined_call_operand.vmem [shape: f32[1,2], index: 2, kind: input, shape index: {}]   ;;  %s687_s3 = inlined_call_operand.vmem [shape: f32[16,2], index: 3, kind: output, shape index: {}]  }
   0x1 LB: > { %s390_s13 = sadd.s32 4294967295, %s468_s12   ;;  %p394_p0 = scmp.ge.s32.totalorder %s468_s12, 1  ;;  %s468_s12 = sphi %s492_s12, %s13_s12  }
   0x2   : > { %p137_p1 = scmp.lt.s32.totalorder %s468_s12, 3 }
   0x4   : > { %p138_p2 = pnand %p394_p0, %p137_p1 }
   0x5   : > { %p522_p3 = scmp.lt.s32.totalorder (!%p138_p2), %s390_s13, 1 }
   0x6   : > { %141 = sbr.rel (%p138_p2) target bundleno = 249 (0xf9), region = 32 }
   0xb   : > { %v206_v0 = vld [vmem:[%s685_s1 + $0xf0] sm:$0xff]  ;;  %v207_v1 = vld [vmem:[%s685_s1 + $0xf8] sm:$0xff]  ;;  %v470_v3 = vmov 0.0   ;;  %vm471_vm0 = vmmov 0   ;;  %v204_v10 = vld [vmem:[%s685_s1 + $0xe0] sm:$0xff]  ;;  %s690_s13 = smov (!%p522_p3, %s390_s13), 1 }
   0xc   : > { %v222_v2 = vld [vmem:[%s685_s1 + $0x170] sm:$0xff]  ;;  %431 = vmatprep.subr.bf16.mxu1 %v470_v3  ;;  %v239_v4 = vpack.c.bf16 %v207_v1, %v206_v0  ;;  %v223_v5 = vld [vmem:[%s685_s1 + $0x178] sm:$0xff]  ;;  %447 = vmatprep.mubr.msk.bf16.mxu1 %vm471_vm0, %v470_v3  ;;  %v205_v11 = vld [vmem:[%s685_s1 + $0xe8] sm:$0xff]  ;;  %s451_s11 = smul.u32 24, %s690_s13  ;;  %s396_s18 = sshll.u32 %s690_s13, 3  ;;  %vm335_vm1 = vcmask 15360  }
   0xd   : > { %v190_v6 = vld [vmem:[%s685_s1 + $0x70] sm:$0xff]  ;;  %v191_v7 = vld [vmem:[%s685_s1 + $0x78] sm:$0xff]  ;;  %v247_v8 = vpack.c.bf16 %v223_v5, %v222_v2  ;;  %v220_v12 = vld [vmem:[%s685_s1 + $0x160] sm:$0xff]  ;;  %v238_v13 = vpack.c.bf16 %v205_v11, %v204_v10  ;;  %s168_s20 = scalar_lea.vmem %s687_s3, %s396_s18 }
   0xe   : > { %v231_v9 = vpack.c.bf16 %v191_v7, %v190_v6  ;;  %400 = vmatprep.subr.bf16.mxu0 %v239_v4  ;;  %v221_v14 = vld [vmem:[%s685_s1 + $0x168] sm:$0xff]  ;;  %v188_v15 = vld [vmem:[%s685_s1 + $0x60] sm:$0xff]  ;;  %v202_v19 = vld [vmem:[%s685_s1 + $0xd0] sm:$0xff]  ;;  %s611_s29 = scalar_lea.vmem %s684_s0, %s451_s11 }
   0xf   : > { %v189_v16 = vld [vmem:[%s685_s1 + $0x68] sm:$0xff]  ;;  %432 = vmatpush3.bf16.msra.mxu1 %v247_v8  ;;  %v246_v17 = vpack.c.bf16 %v221_v14, %v220_v12  ;;  %v203_v20 = vld [vmem:[%s685_s1 + $0xd8] sm:$0xff]  ;;  %v218_v21 = vld [vmem:[%s685_s1 + $0x150] sm:$0xff] }
  0x10   : > { %401 = vmatpush3.bf16.msra.mxu0 %v231_v9  ;;  %v230_v18 = vpack.c.bf16 %v189_v16, %v188_v15  ;;  %433 = vmatprep.subr.bf16.mxu1 %v470_v3  ;;  %v237_v22 = vpack.c.bf16 %v203_v20, %v202_v19  ;;  %v219_v23 = vld [vmem:[%s685_s1 + $0x158] sm:$0xff]  ;;  %v186_v24 = vld [vmem:[%s685_s1 + $0x50] sm:$0xff]  ;;  %v200_v26 = vld [vmem:[%s685_s1 + $0xc0] sm:$0xff] }
  0x11   : > { %402 = vmatprep.subr.bf16.mxu0 %v238_v13  ;;  %v187_v25 = vld [vmem:[%s685_s1 + $0x58] sm:$0xff]  ;;  %v201_v27 = vld [vmem:[%s685_s1 + $0xc8] sm:$0xff]  ;;  %v245_v28 = vpack.c.bf16 %v219_v23, %v218_v21  ;;  %v216_v30 = vld [vmem:[%s685_s1 + $0x140] sm:$0xff] }
  0x12   : > { %v229_v29 = vpack.c.bf16 %v187_v25, %v186_v24  ;;  %v236_v31 = vpack.c.bf16 %v201_v27, %v200_v26  ;;  %v217_v32 = vld [vmem:[%s685_s1 + $0x148] sm:$0xff]  ;;  %v184_v33 = vld [vmem:[%s685_s1 + $0x40] sm:$0xff]  ;;  %v198_v35 = vld [vmem:[%s685_s1 + $0xb0] sm:$0xff] }
  0x13   : > { %434 = vmatpush3.bf16.msra.mxu1 %v246_v17  ;;  %v185_v34 = vld [vmem:[%s685_s1 + $0x48] sm:$0xff]  ;;  %v199_v36 = vld [vmem:[%s685_s1 + $0xb8] sm:$0xff]  ;;  %v244_v37 = vpack.c.bf16 %v217_v32, %v216_v30  ;;  %v214_v39 = vld [vmem:[%s685_s1 + $0x130] sm:$0xff] }
  0x14   : > { %403 = vmatpush3.bf16.msra.mxu0 %v230_v18  ;;  %435 = vmatprep.subr.bf16.mxu1 %v470_v3  ;;  %v228_v38 = vpack.c.bf16 %v185_v34, %v184_v33  ;;  %v235_v40 = vpack.c.bf16 %v199_v36, %v198_v35  ;;  %v215_v41 = vld [vmem:[%s685_s1 + $0x138] sm:$0xff]  ;;  %v182_v42 = vld [vmem:[%s685_s1 + $0x30] sm:$0xff]  ;;  %v196_v44 = vld [vmem:[%s685_s1 + $0xa0] sm:$0xff] }
  0x15   : > { %404 = vmatprep.subr.bf16.mxu0 %v237_v22  ;;  %v183_v43 = vld [vmem:[%s685_s1 + $0x38] sm:$0xff]  ;;  %v197_v45 = vld [vmem:[%s685_s1 + $0xa8] sm:$0xff]  ;;  %v243_v46 = vpack.c.bf16 %v215_v41, %v214_v39  ;;  %v212_v48 = vld [vmem:[%s685_s1 + $0x120] sm:$0xff] }
  0x16   : > { %v227_v47 = vpack.c.bf16 %v183_v43, %v182_v42  ;;  %v171_v49 = vld [vmem:[%s611_s29 + $0x8] sm:$0xff]  ;;  %v234_v50 = vpack.c.bf16 %v197_v45, %v196_v44  ;;  %v180_v52 = vld [vmem:[%s685_s1 + $0x20] sm:$0xff]  ;;  %v194_v55 = vld [vmem:[%s685_s1 + $0x90] sm:$0xff] }
  0x17   : > { %436 = vmatpush3.bf16.msra.mxu1 %v245_v28  ;;  %v213_v51 = vld [vmem:[%s685_s1 + $0x128] sm:$0xff]  ;;  %v174_v54 = vpack.c.bf16 %v171_v49, %v171_v49  ;;  %v195_v56 = vld [vmem:[%s685_s1 + $0x98] sm:$0xff]  ;;  %v210_v59 = vld [vmem:[%s685_s1 + $0x110] sm:$0xff] }
  0x18   : > { %405 = vmatpush3.bf16.msra.mxu0 %v229_v29  ;;  %437 = vmatprep.subr.bf16.mxu1 %v470_v3  ;;  %v181_v53 = vld [vmem:[%s685_s1 + $0x28] sm:$0xff]  ;;  %v242_v57 = vpack.c.bf16 %v213_v51, %v212_v48  ;;  %v233_v60 = vpack.c.bf16 %v195_v56, %v194_v55  ;;  %v211_v61 = vld [vmem:[%s685_s1 + $0x118] sm:$0xff]  ;;  %v178_v62 = vld [vmem:[%s685_s1 + $0x10] sm:$0xff] }
  0x19   : > { %406 = vmatprep.subr.bf16.mxu0 %v236_v31  ;;  %287 = vmatprep.mubr.bf16.mxu0 %v174_v54  ;;  %v226_v58 = vpack.c.bf16 %v181_v53, %v180_v52  ;;  %v179_v63 = vld [vmem:[%s685_s1 + $0x18] sm:$0xff]  ;;  %v192_v0 = vld [vmem:[%s685_s1 + $0x80] sm:$0xff]  ;;  %v193_v1 = vld [vmem:[%s685_s1 + $0x88] sm:$0xff]  ;;  %v241_v2 = vpack.c.bf16 %v211_v61, %v210_v59 }
  0x1a   : > { %v225_v4 = vpack.c.bf16 %v179_v63, %v178_v62  ;;  %v208_v5 = vld [vmem:[%s685_s1 + $0x100] sm:$0xff]  ;;  %v232_v6 = vpack.c.bf16 %v193_v1, %v192_v0  ;;  %v209_v7 = vld [vmem:[%s685_s1 + $0x108] sm:$0xff]  ;;  %v172_v12 = vld [vmem:[%s611_s29 + $0x10] sm:$0xff] }
  0x1b   : > { %438 = vmatpush3.bf16.msra.mxu1 %v244_v37  ;;  %v176_v8 = vld [vmem:[%s685_s1] sm:$0xff]  ;;  %v177_v9 = vld [vmem:[%s685_s1 + $0x8] sm:$0xff]  ;;  %v240_v10 = vpack.c.bf16 %v209_v7, %v208_v5  ;;  %v175_v14 = vpack.c.bf16 %v172_v12, %v172_v12 }
  0x1c   : > { %407 = vmatpush3.bf16.msra.mxu0 %v228_v38  ;;  %439 = vmatprep.subr.bf16.mxu1 %v470_v3  ;;  %v224_v11 = vpack.c.bf16 %v177_v9, %v176_v8  ;;  %v170_v13 = vld [vmem:[%s611_s29] sm:$0xff] }
  0x1d   : > { %408 = vmatprep.subr.bf16.mxu0 %v235_v40  ;;  %v173_v15 = vpack.c.bf16 %v170_v13, %v170_v13  ;;  %v397_v19 = vld [vmem:[%s686_s2] ss:$0 sm:$0xff] }
  0x1f   : > { %440 = vmatpush3.bf16.msra.mxu1 %v243_v46 }
  0x20   : > { %409 = vmatpush3.bf16.msra.mxu0 %v227_v47  ;;  %441 = vmatprep.subr.bf16.mxu1 %v470_v3 }
  0x21   : > { %410 = vmatprep.subr.bf16.mxu0 %v234_v50 }
  0x23   : > { %442 = vmatpush3.bf16.msra.mxu1 %v242_v57 }
  0x24   : > { %411 = vmatpush3.bf16.msra.mxu0 %v226_v58  ;;  %443 = vmatprep.subr.bf16.mxu1 %v470_v3 }
  0x25   : > { %412 = vmatprep.subr.bf16.mxu0 %v233_v60 }
  0x27   : > { %444 = vmatpush3.bf16.msra.mxu1 %v241_v2 }
  0x28   : > { %413 = vmatpush3.bf16.msra.mxu0 %v225_v4  ;;  %445 = vmatprep.subr.bf16.mxu1 %v470_v3 }
  0x29   : > { %414 = vmatprep.subr.bf16.mxu0 %v232_v6 }
  0x2b   : > { %446 = vmatpush3.bf16.msra.mxu1 %v240_v10 }
  0x2c   : > { %415 = vmatpush3.bf16.msra.mxu0 %v224_v11 }
  0x2e   : > { %448 = vmatmul.mubr.bf16.vlgmr.msra.gmra.mxu1 %v175_v14 }
  0x2f   : > { %288 = vmatmul.mubr.bf16.vlgmr.msra.gmra.mxu0 %v173_v15 }
  0xee   : > { %v329_v16 = vpop.f32.mrf.mxu1 }
  0xef   : > { %v416_v17 = vpop.f32.mrf.mxu0 }
  0xf0   : > { %v449_v18 = vpop.f32.mrf.mxu1 }
  0xf1   : > { %v417_v20 = vpop.f32.mrf.mxu0 }
  0xf2   : > { %v418_v21 = vadd.f32 %v417_v20, %v416_v17  ;;  %v332_v22 = vpop.f32.mrf.mxu1 }
  0xf3   : > { %v419_v23 = vpop.f32.mrf.mxu0 }
  0xf4   : > { %v290_v3 = vadd.f32 %v418_v21, %v397_v19  ;;  %v450_v24 = vpop.f32.mrf.mxu1 }
  0xf5   : > { %v420_v25 = vpop.f32.mrf.mxu0 }
  0xf6   : > { %v330_v26 = vadd.f32 %v329_v16, %v290_v3 }
  0xf8   : > { %336 = vst.msk [vmem:[%s168_s20] sm:$0xff] %vm335_vm1, %v330_v26 }
  0xf9 PF: > { %s13_s12 = sadd.s32 1, %s468_s12  }
  0xfa   : > { %p10_p4 = scmp.ge.s32.totalorder %s13_s12, 4  }
  0xfc   :  { %12 = sbr.rel (!%p10_p4) target bundleno = 1 (0x1), region = 62 }

</bundles_post_ra>
